<compile_context>
chip_gen: v6e
topology: v6e:2x2x1
jax: 0.10.0
libtpu: 0.0.40
codegen_flags: <defaults>
</compile_context>

<pallas_src>
import math
from functools import partial

import jax
import jax.numpy as jnp
from jax import lax
from jax.experimental import pallas as pl
from jax.experimental.pallas import tpu as pltpu

_NEG = -1.0e30            # plain python float (a jnp scalar here becomes a captured kernel constant)
_LANE = 128
_ROW_TILE_TARGET = 1024   # rows per step for the dense linears
_SEQ_TILE_TARGET = 1024   # sequence rows per step for the attention passes


# --------------------------------------------------------------------------- #
# helpers
# --------------------------------------------------------------------------- #
def _round_up(x, m):
    return ((x + m - 1) // m) * m


def _divisor_tile(n, target):
    """Largest multiple of 8 that divides n and is <= target."""
    best, d, lim = 0, 8, min(n, target)
    while d <= lim:
        if n % d == 0:
            best = d
        d += 8
    if best == 0:
        raise ValueError(f"size {n} must be a multiple of 8")
    return best


def _const_spec(shape):
    """BlockSpec for a block whose index never changes.

    Constant-index blocks are fetched once; request single buffering so the resident copy is not
    duplicated (frees VMEM for larger seq/row tiles, most valuable on v7x's 64 MiB).
    """
    index_map = lambda *_: (0,) * len(shape)
    try:
        return pl.BlockSpec(shape, index_map, pipeline_mode=pl.Buffered(1))
    except (TypeError, ValueError, AttributeError):   # older jax without pipeline_mode support
        return pl.BlockSpec(shape, index_map)


def _compiler_params(dimension_semantics):
    kwargs = dict(dimension_semantics=dimension_semantics)
    try:
        cap = int(pltpu.get_tpu_info().vmem_capacity_bytes)
        # get_tpu_info may report chip-level capacity (v7x has 2 TCs); clamp to the smallest
        # per-TensorCore VMEM across generations (64 MiB) before taking 3/4 headroom.
        kwargs["vmem_limit_bytes"] = min(cap, 64 * 1024 * 1024) * 3 // 4
    except Exception:
        pass
    return pltpu.CompilerParams(**kwargs)


# --------------------------------------------------------------------------- #
# Pallas kernels
# --------------------------------------------------------------------------- #
def _qkv_kernel(x_ref, w_ref, q_ref, k_ref, v_ref, *, inner):
    # Fused QKV: one (TR, dim) @ (dim, 3*inner) bf16 MXU stream, f32 accumulation.
    y = jnp.dot(x_ref[...], w_ref[...], preferred_element_type=jnp.float32)   # (TR, 3*inner)
    q_ref[...] = y[:, :inner].astype(q_ref.dtype)
    k_ref[...] = y[:, inner:2 * inner].astype(k_ref.dtype)
    v_ref[...] = y[:, 2 * inner:].astype(v_ref.dtype)


def _linear_bias_kernel(x_ref, w_ref, b_ref, o_ref):
    # to_out projection (+ bias): bf16 operands, f32 accumulation / output.
    o_ref[...] = (jnp.dot(x_ref[...], w_ref[...], preferred_element_type=jnp.float32)
                  + b_ref[...])


def _key_max_kernel(k_ref, pbd_ref, hof_ref, o_ref, *, H):
    # Parallel pass 1: per-tile partial max of the key feature logits (torch.max(data_dash)),
    # written as a lane-dense (8, 128) block and reduced in the wrapper.
    kd = jnp.dot(k_ref[...], pbd_ref[...], preferred_element_type=jnp.float32)   # (TK, Fp)
    kd = jnp.where(hof_ref[...] < H, kd, _NEG)                                   # drop padded lanes
    m = jnp.max(jnp.max(kd, axis=1, keepdims=True), axis=0, keepdims=True)       # (1, 1)
    o_ref[...] = jnp.broadcast_to(m, o_ref.shape)


def _context_kernel(kmax_ref, k_ref, v_ref, pbd_ref, hof_ref, hoi_ref, bd_ref,
                    ctx_ref, kcum_ref, *, H, nrm2_half, ratio, eps):
    # Pass 2: context = k'^T v and k' column sums, accumulated directly into the resident
    # output blocks (grid = (batch, seq-tile), seq-tile is the reduction axis).
    t = pl.program_id(1)

    @pl.when(t == 0)
    def _init():
        ctx_ref[...] = jnp.zeros_like(ctx_ref)
        kcum_ref[...] = jnp.zeros_like(kcum_ref)

    k_bf = k_ref[...]                                   # (TN, inner) bf16
    kf = k_bf.astype(jnp.float32)
    hof = hof_ref[...]                                  # (1, Fp)  head-of-feature (>= H on padding)
    hoi = hoi_ref[...]                                  # (1, inner) head-of-inner-column
    kd = jnp.dot(k_bf, pbd_ref[...], preferred_element_type=jnp.float32)   # (TN, Fp)

    # per-(row, head) stabiliser: sum(k^2)/2 * nrm^2, broadcast onto that head's feature lanes
    kk = kf * kf
    sub = jnp.zeros_like(kd)
    for h in range(H):                                  # static unroll, H is small
        diag_h = nrm2_half * jnp.sum(jnp.where(hoi == h, kk, 0.0), axis=-1, keepdims=True)
        sub = sub + jnp.where(hof == h, diag_h, 0.0)

    kp = ratio * (jnp.exp(kd - sub - kmax_ref[0, 0]) + eps)   # kmax: SMEM scalar
    kp = jnp.where(hof < H, kp, 0.0)                          # zero padded feature lanes

    # context += k'^T v : contract the sequence dim directly (no transpose copies)
    ctx_ref[...] += lax.dot_general(
        kp.astype(jnp.bfloat16), v_ref[...],
        (((0,), (0,)), ((), ())), preferred_element_type=jnp.float32)[None]
    kcum_ref[...] += jnp.sum(kp, axis=0, keepdims=True)[None]

    @pl.when(t == pl.num_programs(1) - 1)
    def _finalize():
        # zero the cross-head blocks once per batch (instead of masking per q tile)
        ctx_ref[...] = ctx_ref[...] * bd_ref[...][None]


def _apply_kernel(q_ref, pbd_ref, hof_ref, hoi_ref, repfh_ref, rephi_ref,
                  ctx_ref, kcum_ref, o_ref, *, H, nrm2_half, ratio, eps):
    # Pass 3 (fully parallel): q' feature map + linear attention read-out for one seq tile.
    q_bf = q_ref[...]                                   # (TN, inner) bf16
    qf = q_bf.astype(jnp.float32)
    hof = hof_ref[...]
    hoi = hoi_ref[...]
    qd = jnp.dot(q_bf, pbd_ref[...], preferred_element_type=jnp.float32)   # (TN, Fp)

    qq = qf * qf
    sub = jnp.zeros_like(qd)
    for h in range(H):
        diag_h = nrm2_half * jnp.sum(jnp.where(hoi == h, qq, 0.0), axis=-1, keepdims=True)
        m_h = jnp.max(jnp.where(hof == h, qd, _NEG), axis=-1, keepdims=True)   # per-head row max
        sub = sub + jnp.where(hof == h, diag_h + m_h, 0.0)

    qp = ratio * (jnp.exp(qd - sub) + eps)
    qp = jnp.where(hof < H, qp, 0.0)
    qp_bf = qp.astype(jnp.bfloat16)

    ctx = ctx_ref[0]                                    # (Fp, inner) f32, already block-diag masked
    kcum = kcum_ref[0]                                  # (1, Fp)    f32
    num = jnp.dot(qp_bf, ctx.astype(jnp.bfloat16), preferred_element_type=jnp.float32)  # (TN, inner)

    # denominator is a per-head scalar: two thin matmuls instead of a (Fp x inner) one
    den_h = jnp.dot(qp * kcum, repfh_ref[...], preferred_element_type=jnp.float32)       # (TN, H)
    den_inv = jnp.dot(1.0 / den_h, rephi_ref[...], preferred_element_type=jnp.float32)   # (TN, inner)

    o_ref[...] = (num * den_inv).astype(o_ref.dtype)


# --------------------------------------------------------------------------- #
# Forward wrapper
# --------------------------------------------------------------------------- #
def performer_attention_forward(x, params):
    """PerformerAttention.forward(x)[0] (dropout p=0 is identity)."""
    B, N, dim = x.shape
    H = int(params["heads"])
    Dh = int(params["dim_head"])
    inner = H * Dh
    proj = params["proj"]                       # (M, Dh)
    M = proj.shape[0]
    F = H * M                                   # densely packed feature axis
    Fp = _round_up(F, _LANE)
    R = B * N

    nrm = float(Dh) ** -0.25
    nrm2_half = 0.5 * nrm * nrm
    ratio = float(M) ** -0.5
    eps = 1e-4

    # ---- layout plumbing done once in the wrapper: bf16 MXU operands, dense-packed projection ----
    x2 = x.reshape(R, dim).astype(jnp.bfloat16)
    w_qkv = jnp.concatenate([params["wq"].T, params["wk"].T, params["wv"].T],
                            axis=1).astype(jnp.bfloat16)                    # (dim, 3*inner)
    w_out = params["wo"].T.astype(jnp.bfloat16)                             # (inner, dim)
    b_out = params["bo"].reshape(1, dim).astype(jnp.float32)

    # block-diagonal projection, features packed densely across heads (nrm folded in)
    pbd = jnp.einsum("hg,dm->hdgm", jnp.eye(H, dtype=jnp.float32), proj.T * nrm)
    pbd = pbd.reshape(inner, F)
    pbd = jnp.pad(pbd, ((0, 0), (0, Fp - F))).astype(jnp.bfloat16)          # (inner, Fp)

    f_ids = jnp.arange(Fp, dtype=jnp.int32)
    i_ids = jnp.arange(inner, dtype=jnp.int32)
    h_ids = jnp.arange(H, dtype=jnp.int32)
    hof = (f_ids // M).reshape(1, Fp)                                       # >= H on padded lanes
    hoi = (i_ids // Dh).reshape(1, inner)
    bd_mask = ((f_ids[:, None] // M) == (i_ids[None, :] // Dh)).astype(jnp.float32)   # (Fp, inner)
    rep_fh = ((f_ids[:, None] // M) == h_ids[None, :]).astype(jnp.float32)            # (Fp, H)
    rep_hi = (h_ids[:, None] == (i_ids[None, :] // Dh)).astype(jnp.float32)           # (H, inner)

    # ---- fused QKV projection (single bf16 MXU stream per row tile) ----
    TR = _divisor_tile(R, _ROW_TILE_TARGET)
    GR = R // TR
    q, k, v = pl.pallas_call(
        partial(_qkv_kernel, inner=inner),
        out_shape=tuple(jax.ShapeDtypeStruct((R, inner), jnp.bfloat16) for _ in range(3)),
        grid=(GR,),
        in_specs=[pl.BlockSpec((TR, dim), lambda i: (i, 0)),
                  _const_spec((dim, 3 * inner))],
        out_specs=tuple(pl.BlockSpec((TR, inner), lambda i: (i, 0)) for _ in range(3)),
        compiler_params=_compiler_params(("parallel",)),
    )(x2, w_qkv)

    # ---- pass 1: global key max (torch.max(data_dash)), parallel partial maxima ----
    TK = _divisor_tile(R, _SEQ_TILE_TARGET)
    GK = R // TK
    partial_max = pl.pallas_call(
        partial(_key_max_kernel, H=H),
        out_shape=jax.ShapeDtypeStruct((GK * 8, _LANE), jnp.float32),
        grid=(GK,),
        in_specs=[pl.BlockSpec((TK, inner), lambda i: (i, 0)),
                  _const_spec((inner, Fp)),
                  _const_spec((1, Fp))],
        out_specs=pl.BlockSpec((8, _LANE), lambda i: (i, 0)),
        compiler_params=_compiler_params(("parallel",)),
    )(k, pbd, hof)
    kmax = jnp.max(partial_max).reshape(1, 1)

    # ---- pass 2: context = k'^T v and k' column sums, per batch ----
    TN = _divisor_tile(N, _SEQ_TILE_TARGET)
    NT = N // TN
    ctx, kcum = pl.pallas_call(
        partial(_context_kernel, H=H, nrm2_half=nrm2_half, ratio=ratio, eps=eps),
        out_shape=(jax.ShapeDtypeStruct((B, Fp, inner), jnp.float32),
                   jax.ShapeDtypeStruct((B, 1, Fp), jnp.float32)),
        grid=(B, NT),
        in_specs=[
            pl.BlockSpec(memory_space=pltpu.MemorySpace.SMEM),               # kmax scalar
            pl.BlockSpec((TN, inner), lambda b, t: (b * NT + t, 0)),         # k tile
            pl.BlockSpec((TN, inner), lambda b, t: (b * NT + t, 0)),         # v tile
            _const_spec((inner, Fp)),                                        # projection (bf16)
            _const_spec((1, Fp)),                                            # head-of-feature
            _const_spec((1, inner)),                                         # head-of-inner-col
            _const_spec((Fp, inner)),                                        # block-diag mask
        ],
        out_specs=(pl.BlockSpec((1, Fp, inner), lambda b, t: (b, 0, 0)),
                   pl.BlockSpec((1, 1, Fp), lambda b, t: (b, 0, 0))),
        compiler_params=_compiler_params(("parallel", "arbitrary")),
    )(kmax, k, v, pbd, hof, hoi, bd_mask)

    # ---- pass 3: q' feature map + linear-attention read-out (fully parallel) ----
    attn = pl.pallas_call(
        partial(_apply_kernel, H=H, nrm2_half=nrm2_half, ratio=ratio, eps=eps),
        out_shape=jax.ShapeDtypeStruct((R, inner), jnp.bfloat16),
        grid=(B, NT),
        in_specs=[
            pl.BlockSpec((TN, inner), lambda b, t: (b * NT + t, 0)),         # q tile
            _const_spec((inner, Fp)),
            _const_spec((1, Fp)),
            _const_spec((1, inner)),
            _const_spec((Fp, H)),                                            # feature -> head
            _const_spec((H, inner)),                                         # head -> inner cols
            pl.BlockSpec((1, Fp, inner), lambda b, t: (b, 0, 0)),            # context
            pl.BlockSpec((1, 1, Fp), lambda b, t: (b, 0, 0)),                # k' column sums
        ],
        out_specs=pl.BlockSpec((TN, inner), lambda b, t: (b * NT + t, 0)),
        compiler_params=_compiler_params(("parallel", "parallel")),
    )(q, pbd, hof, hoi, rep_fh, rep_hi, ctx, kcum)

    # ---- output projection (+bias) ----
    out = pl.pallas_call(
        _linear_bias_kernel,
        out_shape=jax.ShapeDtypeStruct((R, dim), jnp.float32),
        grid=(GR,),
        in_specs=[pl.BlockSpec((TR, inner), lambda i: (i, 0)),
                  _const_spec((inner, dim)),
                  _const_spec((1, dim))],
        out_specs=pl.BlockSpec((TR, dim), lambda i: (i, 0)),
        compiler_params=_compiler_params(("parallel",)),
    )(attn, w_out, b_out)

    return out.reshape(B, N, dim)


# --------------------------------------------------------------------------- #
# Parameter construction (deterministic, matches the module __init__ shapes)
# --------------------------------------------------------------------------- #
def gaussian_orthogonal_random_matrix(key, nb_rows, nb_cols):
    """scaling=0 variant of the torch helper, built with jnp.linalg.qr."""
    nb_full_blocks = nb_rows // nb_cols
    blocks = []
    for _ in range(nb_full_blocks):
        key, sk = jax.random.split(key)
        unstructured = jax.random.normal(sk, (nb_cols, nb_cols), jnp.float32)
        qmat, _ = jnp.linalg.qr(unstructured)
        blocks.append(qmat.T)
    rem = nb_rows - nb_full_blocks * nb_cols
    if rem > 0:
        key, sk = jax.random.split(key)
        unstructured = jax.random.normal(sk, (nb_cols, nb_cols), jnp.float32)
        qmat, _ = jnp.linalg.qr(unstructured)
        blocks.append(qmat.T[:rem])
    final = jnp.concatenate(blocks, axis=0)
    key, sk = jax.random.split(key)
    multiplier = jnp.linalg.norm(
        jax.random.normal(sk, (nb_rows, nb_cols), jnp.float32), axis=1)
    return multiplier[:, None] * final


def init_params(key, dim, heads, dim_head, nb_features):
    inner = heads * dim_head
    ks = jax.random.split(key, 6)

    def lin_w(k, out_f, in_f):
        bound = 1.0 / math.sqrt(in_f)
        return jax.random.uniform(k, (out_f, in_f), jnp.float32, -bound, bound)

    return {
        "heads": heads,
        "dim_head": dim_head,
        "wq": lin_w(ks[0], inner, dim),
        "wk": lin_w(ks[1], inner, dim),
        "wv": lin_w(ks[2], inner, dim),
        "wo": lin_w(ks[3], dim, inner),
        "bo": jax.random.uniform(
            ks[4], (dim,), jnp.float32, -1.0 / math.sqrt(inner), 1.0 / math.sqrt(inner)),
        "proj": gaussian_orthogonal_random_matrix(ks[5], nb_features, dim_head),
    }


# --------------------------------------------------------------------------- #
# Pure-JAX f32 reference (mirrors the torch code path) for a sanity check
# --------------------------------------------------------------------------- #
def reference_forward(x, params):
    B, N, dim = x.shape
    H, Dh = params["heads"], params["dim_head"]
    q = x.reshape(B * N, dim) @ params["wq"].T
    k = x.reshape(B * N, dim) @ params["wk"].T
    v = x.reshape(B * N, dim) @ params["wv"].T

    def sh(t):
        return t.reshape(B, N, H, Dh).transpose(0, 2, 1, 3)

    q, k, v = map(sh, (q, k, v))
    proj = params["proj"]
    M = proj.shape[0]
    nrm = Dh ** (-0.25)
    ratio = M ** (-0.5)
    eps = 1e-4
    qd = jnp.einsum("bhnd,md->bhnm", q * nrm, proj)
    kd = jnp.einsum("bhnd,md->bhnm", k * nrm, proj)
    diag_q = jnp.sum(q ** 2, -1, keepdims=True) / 2.0 * nrm ** 2
    diag_k = jnp.sum(k ** 2, -1, keepdims=True) / 2.0 * nrm ** 2
    qp = ratio * (jnp.exp(qd - diag_q - jnp.max(qd, -1, keepdims=True)) + eps)
    kp = ratio * (jnp.exp(kd - diag_k - jnp.max(kd)) + eps)
    k_cumsum = kp.sum(-2)
    d_inv = 1.0 / jnp.einsum("bhnm,bhm->bhn", qp, k_cumsum)
    context = jnp.einsum("bhnm,bhnd->bhmd", kp, v)
    out = jnp.einsum("bhmd,bhnm,bhn->bhnd", context, qp, d_inv)
    out = out.transpose(0, 2, 1, 3).reshape(B, N, H * Dh)
    return (out @ params["wo"].T + params["bo"]).reshape(B, N, dim)


# --------------------------------------------------------------------------- #
if __name__ == "__main__":
    # Small shapes consistent with the module (dim divisible by heads, seq multiple of 8).
    B, N, DIM = 2, 16, 32
    HEADS, DIM_HEAD = 4, 8
    NB_FEATURES = int(DIM_HEAD * math.log(DIM_HEAD))  # default nb_features -> 16

    key = jax.random.PRNGKey(0)
    kx, kparams = jax.random.split(key)
    x = jax.random.normal(kx, (B, N, DIM), jnp.float32)
    params = init_params(kparams, DIM, HEADS, DIM_HEAD, NB_FEATURES)

    out = jax.block_until_ready(performer_attention_forward(x, params))
    ref = jax.block_until_ready(reference_forward(x, params))

    max_err = float(jnp.max(jnp.abs(out - ref)))
    assert out.shape == (B, N, DIM)
    # bf16 MXU operands (f32 accumulation) -> tolerance relaxed vs the pure-f32 reference
    assert max_err < 3e-2, f"mismatch vs reference: {max_err}"

    print("KERNEL_OK")
</pallas_src>

<mosaic_0001>
module attributes {stable_mosaic.version = 11 : i64} {
  func.func @_qkv_kernel(%arg0: i32, %arg1: memref<32x32xbf16, #tpu.memory_space<vmem>>, %arg2: memref<32x96xbf16, #tpu.memory_space<vmem>>, %arg3: memref<32x32xbf16, #tpu.memory_space<vmem>>, %arg4: memref<32x32xbf16, #tpu.memory_space<vmem>>, %arg5: memref<32x32xbf16, #tpu.memory_space<vmem>>) attributes {dimension_semantics = [#tpu.dimension_semantics<parallel>], iteration_bounds = array<i64: 1>, scalar_prefetch = 0 : i64, scratch_operands = 0 : i64, tpu.core_type = #tpu.core_type<tc>, window_params = [{transform_indices = @transform_0, window_bounds = array<i64: 32, 32>}, {pipeline_mode = #tpu.pipeline_mode<synchronous>, transform_indices = @transform_1, window_bounds = array<i64: 32, 96>}, {transform_indices = @transform_2, window_bounds = array<i64: 32, 32>}, {transform_indices = @transform_3, window_bounds = array<i64: 32, 32>}, {transform_indices = @transform_4, window_bounds = array<i64: 32, 32>}]} {
    %c0 = arith.constant 0 : index
    %c0_0 = arith.constant 0 : index
    %0 = vector.load %arg1[%c0, %c0_0] : memref<32x32xbf16, #tpu.memory_space<vmem>>, vector<32x32xbf16>
    %c0_1 = arith.constant 0 : index
    %c0_2 = arith.constant 0 : index
    %1 = vector.load %arg2[%c0_1, %c0_2] : memref<32x96xbf16, #tpu.memory_space<vmem>>, vector<32x96xbf16>
    %cst = arith.constant dense<0.000000e+00> : vector<32x96xf32>
    %2 = tpu.matmul %0, %1, %cst {dimension_numbers = #tpu.dot_dimension_numbers<[1], [0], [0], [1], [0, 0, 1, 1], [], []>} : vector<32x32xbf16>, vector<32x96xbf16>, vector<32x96xf32> -> vector<32x96xf32>
    %3 = vector.extract_strided_slice %2 {offsets = [0, 0], sizes = [32, 32], strides = [1, 1]} : vector<32x96xf32> to vector<32x32xf32>
    %4 = arith.truncf %3 : vector<32x32xf32> to vector<32x32xbf16>
    %c0_3 = arith.constant 0 : index
    %c0_4 = arith.constant 0 : index
    %5 = vector.load %arg3[%c0_3, %c0_4] : memref<32x32xbf16, #tpu.memory_space<vmem>>, vector<32x32xbf16>
    tpu.vector_store %arg3[%c0_3, %c0_4], %4 {strides = array<i32>} : memref<32x32xbf16, #tpu.memory_space<vmem>>, vector<32x32xbf16>,
    %6 = vector.extract_strided_slice %2 {offsets = [0, 32], sizes = [32, 32], strides = [1, 1]} : vector<32x96xf32> to vector<32x32xf32>
    %7 = arith.truncf %6 : vector<32x32xf32> to vector<32x32xbf16>
    %c0_5 = arith.constant 0 : index
    %c0_6 = arith.constant 0 : index
    %8 = vector.load %arg4[%c0_5, %c0_6] : memref<32x32xbf16, #tpu.memory_space<vmem>>, vector<32x32xbf16>
    tpu.vector_store %arg4[%c0_5, %c0_6], %7 {strides = array<i32>} : memref<32x32xbf16, #tpu.memory_space<vmem>>, vector<32x32xbf16>,
    %9 = vector.extract_strided_slice %2 {offsets = [0, 64], sizes = [32, 32], strides = [1, 1]} : vector<32x96xf32> to vector<32x32xf32>
    %10 = arith.truncf %9 : vector<32x32xf32> to vector<32x32xbf16>
    %c0_7 = arith.constant 0 : index
    %c0_8 = arith.constant 0 : index
    %11 = vector.load %arg5[%c0_7, %c0_8] : memref<32x32xbf16, #tpu.memory_space<vmem>>, vector<32x32xbf16>
    tpu.vector_store %arg5[%c0_7, %c0_8], %10 {strides = array<i32>} : memref<32x32xbf16, #tpu.memory_space<vmem>>, vector<32x32xbf16>,
    return
  }
  func.func @transform_0(%arg0: i32) -> (i32, i32) {
    %c0_i32 = arith.constant 0 : i32
    %c0_i32_0 = arith.constant 0 : i32
    return %arg0, %c0_i32 : i32, i32
  }
  func.func @transform_1(%arg0: i32) -> (i32, i32) {
    %c0_i32 = arith.constant 0 : i32
    %c0_i32_0 = arith.constant 0 : i32
    %c0_i32_1 = arith.constant 0 : i32
    return %c0_i32, %c0_i32_0 : i32, i32
  }
  func.func @transform_2(%arg0: i32) -> (i32, i32) {
    %c0_i32 = arith.constant 0 : i32
    %c0_i32_0 = arith.constant 0 : i32
    return %arg0, %c0_i32 : i32, i32
  }
  func.func @transform_3(%arg0: i32) -> (i32, i32) {
    %c0_i32 = arith.constant 0 : i32
    %c0_i32_0 = arith.constant 0 : i32
    return %arg0, %c0_i32 : i32, i32
  }
  func.func @transform_4(%arg0: i32) -> (i32, i32) {
    %c0_i32 = arith.constant 0 : i32
    %c0_i32_0 = arith.constant 0 : i32
    return %arg0, %c0_i32 : i32, i32
  }
}

</mosaic_0001>

<bundles_post_ra>
// kernel: tpu_custom_call.1
= control target key start
LH: loop header
LB: loop body
LE: loop exit
PB: predicated region body
PF: predicated region fallthrough
CT: control target
= control target key end

     0   :  { %10 = vsyncpa [#allocation3], 0  ;;  %s458_s0 = inlined_call_operand.hbm [shape: bf16[32,32], index: 0, kind: input, shape index: {}]   ;;  %s459_s1 = inlined_call_operand.hbm [shape: bf16[32,96], index: 1, kind: input, shape index: {}]   ;;  %s460_s2 = inlined_call_operand.hbm [shape: bf16[32,32], index: 2, kind: output, shape index: {0}]   ;;  %s461_s3 = inlined_call_operand.hbm [shape: bf16[32,32], index: 3, kind: output, shape index: {1}]   ;;  %s462_s4 = inlined_call_operand.hbm [shape: bf16[32,32], index: 4, kind: output, shape index: {2}]  }
   0x1   :  { %11 = vsyncpa [#allocation6], 0 }
   0x2   :  { %12 = vsyncpa [#allocation4], 0 }
   0x3   :  { %13 = vsyncpa [#allocation9], 0  ;;  %s379_s15 = smov [#allocation2]  }
   0x4   :  { %s19_s16 = sshll.u32 %s379_s15, 4  ;;  %s20_s16 = int_to_ptr.vmem [resolvable:$true] %s19_s16 }
   0x5   :  { %s279_s17 = scalar_lea.vmem %s20_s16, 256  ;;  %p284_p1 = scmp.lt.s32.totalorder %s20_s16, %s20_s16 }
   0x6   :  { %p280_p0 = scmp.ne.s32.totalorder %s20_s16, %s279_s17  ;;  %p285_p2 = scmp.lt.s32.totalorder %s279_s17, %s279_s17 }
   0x8   :  { %p286_p3 = por %p285_p2, %p284_p1 }
   0xa   :  { %p287_p4 = pnand %p286_p3, %p280_p0 }
   0xc   :  { %290 = shalt.err (!%p287_p4)
}
   0xd   :  { %s380_s18 = smov 64   ;;  %s381_s19 = smov 4  }
   0xe   :  { %25 = dma.hbm_to_vmem [thread:$0]  %s458_s0, 256, %s20_s16, [#allocation3], %s380_s18, %s380_s18, %s381_s19  }
   0xf   :  { %s382_s22 = smov [#allocation5]  }
  0x10   :  { %s31_s23 = sshll.u32 %s382_s22, 4  ;;  %s32_s23 = int_to_ptr.vmem [resolvable:$true] %s31_s23 }
  0x11   :  { %s299_s24 = scalar_lea.vmem %s32_s23, 256  ;;  %p304_p6 = scmp.lt.s32.totalorder %s32_s23, %s32_s23 }
  0x12   :  { %p300_p5 = scmp.ne.s32.totalorder %s32_s23, %s299_s24  ;;  %p305_p7 = scmp.lt.s32.totalorder %s299_s24, %s299_s24 }
  0x14   :  { %p306_p8 = por %p305_p7, %p304_p6 }
  0x16   :  { %p307_p9 = pnand %p306_p8, %p300_p5 }
  0x18   :  { %310 = shalt.err (!%p307_p9)
}
  0x19   :  { %37 = dma.hbm_to_vmem [thread:$0]  %s459_s1, 256, %s32_s23, [#allocation6], %s380_s18, %s380_s18, %s381_s19  }
  0x1a   :  { %371 = dma.done.wait [#allocation3], 256  }
  0x1b   :  { %372 = vsyncadd [#allocation3], 4294967040 }
  0x1c   :  { %373 = dma.done.wait [#allocation6], 256  }
  0x1d   :  { %374 = vsyncadd [#allocation6], 4294967040  ;;  %v267_v0 = vld [vmem:[#allocation5 + $0x8] sm:$0xff]   ;;  %v268_v1 = vld [vmem:[#allocation5] sm:$0xff]   ;;  %vm75_vm0 = vcmask 261120   ;;  %vm147_vm1 = vcmask 257024  }
  0x1e   :  { %251 = vmatprep.subr.bf16.mxu0 %v267_v0  ;;  %v269_v2 = vld [vmem:[#allocation2] sm:$0xff]   ;;  %v270_v3 = vld [vmem:[#allocation2 + $0x8] sm:$0xff]   ;;  %s383_s0 = smov 96   ;;  %s384_s1 = smov [#allocation7]  }
  0x1f   :  { %252 = vmatpush3.bf16.msra.mxu0 %v267_v0  ;;  %255 = vmatprep.mubr.msk.bf16.mxu0 %vm75_vm0, %v269_v2  ;;  %s189_s27 = sshll.u32 %s384_s1, 4  ;;  %s190_s27 = int_to_ptr.vmem [resolvable:$true] %s189_s27 }
  0x20   :  { %253 = vmatprep.subr.bf16.mxu0 %v268_v1  ;;  %s311_s28 = scalar_lea.vmem %s190_s27, 256  ;;  %p316_p11 = scmp.lt.s32.totalorder %s190_s27, %s190_s27 }
  0x21   :  { %p312_p10 = scmp.ne.s32.totalorder %s190_s27, %s311_s28  ;;  %p317_p12 = scmp.lt.s32.totalorder %s311_s28, %s311_s28 }
  0x23   :  { %254 = vmatpush3.bf16.msra.mxu0 %v268_v1  ;;  %p318_p13 = por %p317_p12, %p316_p11 }
  0x25   :  { %p319_p0 = pnand %p318_p13, %p312_p10 }
  0x26   :  { %256 = vmatmul.mubr.msk.bf16.vlgmr.msra.gmra.mxu0 %vm75_vm0, %v270_v3 }
  0xe6   :  { %v257_v4 = vpop.f32.mrf.mxu0 }
  0xe7   :  { %v245_v5 = vpack.c.bf16 %v257_v4, %v257_v4 }
  0xe8   :  { %v116_v6 = vpop.f32.mrf.mxu0 }
  0xe9   :  { %150 = vst.msk [vmem:[#allocation7 + $0x8] sm:$0xf] %vm147_vm1, %v245_v5  ;;  %v243_v7 = vpack.c.bf16 %v116_v6, %v116_v6  ;;  %156 = vrot.lane.b32.xlu1 %v245_v5, %s383_s0 }
  0xea   :  { %v258_v8 = vpop.f32.mrf.mxu0 }
  0xeb   :  { %148 = vst.msk [vmem:[#allocation7] sm:$0xf] %vm147_vm1, %v243_v7  ;;  %v246_v9 = vpack.c.bf16 %v258_v8, %v258_v8  ;;  %152 = vrot.lane.b32.xlu0 %v243_v7, %s383_s0 }
  0xec   :  { %v119_v10 = vpop.f32.mrf.mxu0 }
  0xed   :  { %151 = vst.msk [vmem:[#allocation7 + $0xc] sm:$0xf] %vm147_vm1, %v246_v9  ;;  %v244_v11 = vpack.c.bf16 %v119_v10, %v119_v10  ;;  %158 = vrot.lane.b32.xlu1 %v246_v9, %s383_s0 }
  0xef   :  { %149 = vst.msk [vmem:[#allocation7 + $0x4] sm:$0xf] %vm147_vm1, %v244_v11  ;;  %168 = vrot.lane.b32.xlu0 %v243_v7, %s380_s18 }
  0xf0   :  { %322 = shalt.err (!%p319_p0)
}
  0xf1   :  { %195 = dma.vmem_to_hbm [thread:$0]  %s190_s27, 256, %s460_s2, [#allocation4], %s380_s18, %s380_s18, %s381_s19  }
  0xf2   :  { %170 = vrot.lane.b32.xlu1 %v244_v11, %s380_s18  ;;  %s385_s5 = smov [#allocation8]   ;;  %s386_s2 = smov [#allocation10]  }
  0xf3   :  { %154 = vrot.lane.b32.xlu0 %v244_v11, %s383_s0  ;;  %s201_s6 = sshll.u32 %s385_s5, 4  ;;  %s213_s7 = sshll.u32 %s386_s2, 4  ;;  %s202_s6 = int_to_ptr.vmem [resolvable:$true] %s201_s6  ;;  %s214_s7 = int_to_ptr.vmem [resolvable:$true] %s213_s7 }
  0xf4   :  { %s331_s8 = scalar_lea.vmem %s202_s6, 256  ;;  %p336_p2 = scmp.lt.s32.totalorder %s202_s6, %s202_s6 }
  0xf5   :  { %p332_p1 = scmp.ne.s32.totalorder %s202_s6, %s331_s8  ;;  %p337_p3 = scmp.lt.s32.totalorder %s331_s8, %s331_s8 }
  0xf6   :  { %174 = vrot.lane.b32.xlu1 %v246_v9, %s380_s18 }
  0xf7   :  { %172 = vrot.lane.b32.xlu0 %v245_v5, %s380_s18  ;;  %p338_p4 = por %p337_p3, %p336_p2 }
  0xf9   :  { %p339_p5 = pnand %p338_p4, %p332_p1 }
 0x15b   :  { %v157_v12 = vpop.permute.xlu1 %156 }
 0x15c   :  { %166 = vst.msk [vmem:[#allocation8 + $0x8] sm:$0xf] %vm147_vm1, %v157_v12 }
 0x15d   :  { %v153_v13 = vpop.permute.xlu0 %152 }
 0x15e   :  { %164 = vst.msk [vmem:[#allocation8] sm:$0xf] %vm147_vm1, %v153_v13 }
 0x15f   :  { %v159_v14 = vpop.permute.xlu1 %158 }
 0x160   :  { %167 = vst.msk [vmem:[#allocation8 + $0xc] sm:$0xf] %vm147_vm1, %v159_v14 }
 0x161   :  { %v169_v15 = vpop.permute.xlu0 %168 }
 0x162   :  { %180 = vst.msk [vmem:[#allocation10] sm:$0xf] %vm147_vm1, %v169_v15 }
 0x164   :  { %v171_v16 = vpop.permute.xlu1 %170 }
 0x165   :  { %181 = vst.msk [vmem:[#allocation10 + $0x4] sm:$0xf] %vm147_vm1, %v171_v16  ;;  %v155_v17 = vpop.permute.xlu0 %154 }
 0x166   :  { %165 = vst.msk [vmem:[#allocation8 + $0x4] sm:$0xf] %vm147_vm1, %v155_v17 }
 0x168   :  { %v175_v18 = vpop.permute.xlu1 %174 }
 0x169   :  { %342 = shalt.err (!%p339_p5)
}
 0x16a   :  { %207 = dma.vmem_to_hbm [thread:$0]  %s202_s6, 256, %s461_s3, [#allocation9], %s380_s18, %s380_s18, %s381_s19   ;;  %183 = vst.msk [vmem:[#allocation10 + $0xc] sm:$0xf] %vm147_vm1, %v175_v18  ;;  %v173_v19 = vpop.permute.xlu0 %172 }
 0x16b   :  { %182 = vst.msk [vmem:[#allocation10 + $0x8] sm:$0xf] %vm147_vm1, %v173_v19  ;;  %s351_s11 = scalar_lea.vmem %s214_s7, 256  ;;  %p356_p7 = scmp.lt.s32.totalorder %s214_s7, %s214_s7 }
 0x16c   :  { %p352_p6 = scmp.ne.s32.totalorder %s214_s7, %s351_s11  ;;  %p357_p8 = scmp.lt.s32.totalorder %s351_s11, %s351_s11 }
 0x16e   :  { %p358_p9 = por %p357_p8, %p356_p7 }
 0x170   :  { %p359_p10 = pnand %p358_p9, %p352_p6 }
 0x172   :  { %362 = shalt.err (!%p359_p10)
}
 0x173   :  { %219 = dma.vmem_to_hbm [thread:$0]  %s214_s7, 256, %s462_s4, [#allocation9], %s380_s18, %s380_s18, %s381_s19  }
 0x174   :  { %375 = dma.done.wait [#allocation4], 256  }
 0x175   :  { %376 = vsyncadd [#allocation4], 4294967040 }
 0x176   :  { %377 = dma.done.wait [#allocation9], 512  }
 0x177   :  { %378 = vsyncadd [#allocation9], 4294966784 }
 0x178   :  { %229 = vsyncpa [#allocation3], 1 }
 0x179   :  { %230 = vsyncpa [#allocation6], 1 }
 0x17a   :  { %231 = vsyncpa [#allocation4], 1 }
 0x17b   :  { %232 = vsyncpa [#allocation9], 1 }

</bundles_post_ra>
